<compile_context>
chip_gen: v5e
topology: v5e:2x2
jax: 0.10.0
libtpu: 0.0.40
codegen_flags: <defaults>
</compile_context>

<pallas_src>
import jax
import jax.numpy as jnp
from jax.experimental import pallas as pl
from jax.experimental.pallas import tpu as pltpu


def _round_up(x, m):
    return (x + m - 1) // m * m


def sys_r_kernel(s_ref, ns_ref, a_ref,
                 w1s_ref, w1n_ref, w1a_ref, b1_ref,
                 w2_ref, b2_ref,
                 w3_ref, b3_ref,
                 out_ref):
    f32 = jnp.float32
    # ---- layer 1 (concat folded in by splitting W1 along K) ----
    h = jnp.dot(s_ref[...], w1s_ref[...].astype(f32), preferred_element_type=f32)
    h = h + jnp.dot(ns_ref[...], w1n_ref[...].astype(f32), preferred_element_type=f32)
    h = h + jnp.dot(a_ref[...], w1a_ref[...].astype(f32), preferred_element_type=f32)
    h = jnp.maximum(h + b1_ref[...], 0.0)
    # ---- layer 2 ----
    h = jnp.dot(h, w2_ref[...].astype(f32), preferred_element_type=f32) + b2_ref[...]
    h = jnp.maximum(h, 0.0)
    # ---- layer 3 ----
    out_ref[...] = jnp.dot(h, w3_ref[...].astype(f32),
                           preferred_element_type=f32) + b3_ref[...]


def sys_r_forward(state, next_state, action, params, *, batch_tile=128):
    """params = [w1s, w1n, w1a, b1, w2, b2, w3, b3]; W: (in,out) bf16, b: (1,out) f32."""
    w1s, w1n, w1a, b1, w2, b2, w3, b3 = params
    B = state.shape[0]
    state_size = state.shape[1]
    action_size = action.shape[1]
    fc1 = w1s.shape[1]
    fc2 = w2.shape[1]

    # Batch tile: multiple of 8 (sublane) or the whole (padded) batch.
    tb = min(batch_tile, _round_up(B, 8))
    Bp = _round_up(B, tb)
    if Bp != B:
        pad = Bp - B
        state = jnp.pad(state, ((0, pad), (0, 0)))
        next_state = jnp.pad(next_state, ((0, pad), (0, 0)))
        action = jnp.pad(action, ((0, pad), (0, 0)))
    grid = (Bp // tb,)

    def row_spec(cols):
        return pl.BlockSpec((tb, cols), lambda i: (i, 0))

    def resident_spec(arr):
        # Constant block index -> weights/biases stay resident in VMEM across steps.
        return pl.BlockSpec(arr.shape, lambda i: (0, 0))

    in_specs = [
        row_spec(state_size), row_spec(state_size), row_spec(action_size),
        resident_spec(w1s), resident_spec(w1n), resident_spec(w1a), resident_spec(b1),
        resident_spec(w2), resident_spec(b2),
        resident_spec(w3), resident_spec(b3),
    ]
    out_specs = pl.BlockSpec((tb, 1), lambda i: (i, 0))

    D = 2 * state_size + action_size
    flops = 2 * Bp * (D * fc1 + fc1 * fc2 + fc2 * 1)
    operands = (state, next_state, action, w1s, w1n, w1a, b1, w2, b2, w3, b3)
    bytes_accessed = sum(int(x.size) * x.dtype.itemsize for x in operands) + Bp * 4

    out = pl.pallas_call(
        sys_r_kernel,
        grid=grid,
        in_specs=in_specs,
        out_specs=out_specs,
        out_shape=jax.ShapeDtypeStruct((Bp, 1), jnp.float32),
        compiler_params=pltpu.CompilerParams(
            dimension_semantics=("parallel",)),
        cost_estimate=pl.CostEstimate(flops=flops, transcendentals=0,
                                      bytes_accessed=bytes_accessed),
    )(*operands)
    return out[:B]


def make_sys_r_params(key, state_size, action_size, fc1_units=256, fc2_units=256,
                      weight_dtype=jnp.bfloat16):
    """nn.Linear-style U(-1/sqrt(fan_in), 1/sqrt(fan_in)) init; W1 pre-split along K."""
    D = 2 * state_size + action_size
    k1, k2, k3 = jax.random.split(key, 3)

    def linear(k, fan_in, fan_out):
        kw, kb = jax.random.split(k)
        bound = 1.0 / (float(fan_in) ** 0.5)
        w = jax.random.uniform(kw, (fan_in, fan_out), jnp.float32, -bound, bound)
        b = jax.random.uniform(kb, (1, fan_out), jnp.float32, -bound, bound)
        return w, b

    w1, b1 = linear(k1, D, fc1_units)
    w2, b2 = linear(k2, fc1_units, fc2_units)
    w3, b3 = linear(k3, fc2_units, 1)

    w1s = w1[:state_size]
    w1n = w1[state_size:2 * state_size]
    w1a = w1[2 * state_size:]
    cast = lambda w: w.astype(weight_dtype)  # bf16 weights halve the HBM->VMEM DMA
    return [cast(w1s), cast(w1n), cast(w1a), b1, cast(w2), b2, cast(w3), b3]


def sys_r_reference(state, next_state, action, params):
    """Pure-JAX reference (same bf16 weights, f32 math) for correctness checking."""
    w1s, w1n, w1a, b1, w2, b2, w3, b3 = params
    f32 = jnp.float32
    xa = jnp.concatenate([state, next_state, action], axis=1)
    w1 = jnp.concatenate([w1s.astype(f32), w1n.astype(f32), w1a.astype(f32)], axis=0)
    h = jax.nn.relu(xa @ w1 + b1)
    h = jax.nn.relu(h @ w2.astype(f32) + b2)
    return h @ w3.astype(f32) + b3


if __name__ == "__main__":
    state_size, action_size, batch = 12, 4, 8
    key = jax.random.PRNGKey(0)
    kp, ks, kn, ka = jax.random.split(key, 4)

    params = make_sys_r_params(kp, state_size, action_size)
    state = jax.random.normal(ks, (batch, state_size), jnp.float32)
    next_state = jax.random.normal(kn, (batch, state_size), jnp.float32)
    action = jax.random.normal(ka, (batch, action_size), jnp.float32)

    q = sys_r_forward(state, next_state, action, params)
    q = jax.block_until_ready(q)

    ref = sys_r_reference(state, next_state, action, params)
    assert q.shape == (batch, 1)
    assert jnp.allclose(q, ref, atol=1e-3, rtol=1e-3)

    print("KERNEL_OK")
</pallas_src>

<mosaic_0001>
module attributes {stable_mosaic.version = 11 : i64} {
  func.func @sys_r_kernel(%arg0: i32, %arg1: memref<8x12xf32, #tpu.memory_space<vmem>>, %arg2: memref<8x12xf32, #tpu.memory_space<vmem>>, %arg3: memref<8x4xf32, #tpu.memory_space<vmem>>, %arg4: memref<12x256xbf16, #tpu.memory_space<vmem>>, %arg5: memref<12x256xbf16, #tpu.memory_space<vmem>>, %arg6: memref<4x256xbf16, #tpu.memory_space<vmem>>, %arg7: memref<1x256xf32, #tpu.memory_space<vmem>>, %arg8: memref<256x256xbf16, #tpu.memory_space<vmem>>, %arg9: memref<1x256xf32, #tpu.memory_space<vmem>>, %arg10: memref<256x1xbf16, #tpu.memory_space<vmem>>, %arg11: memref<1x1xf32, #tpu.memory_space<vmem>>, %arg12: memref<8x1xf32, #tpu.memory_space<vmem>>) attributes {dimension_semantics = [#tpu.dimension_semantics<parallel>], iteration_bounds = array<i64: 1>, scalar_prefetch = 0 : i64, scratch_operands = 0 : i64, tpu.core_type = #tpu.core_type<tc>, window_params = [{transform_indices = @transform_0, window_bounds = array<i64: 8, 12>}, {transform_indices = @transform_1, window_bounds = array<i64: 8, 12>}, {transform_indices = @transform_2, window_bounds = array<i64: 8, 4>}, {pipeline_mode = #tpu.pipeline_mode<synchronous>, transform_indices = @transform_3, window_bounds = array<i64: 12, 256>}, {pipeline_mode = #tpu.pipeline_mode<synchronous>, transform_indices = @transform_4, window_bounds = array<i64: 12, 256>}, {pipeline_mode = #tpu.pipeline_mode<synchronous>, transform_indices = @transform_5, window_bounds = array<i64: 4, 256>}, {pipeline_mode = #tpu.pipeline_mode<synchronous>, transform_indices = @transform_6, window_bounds = array<i64: 1, 256>}, {pipeline_mode = #tpu.pipeline_mode<synchronous>, transform_indices = @transform_7, window_bounds = array<i64: 256, 256>}, {pipeline_mode = #tpu.pipeline_mode<synchronous>, transform_indices = @transform_8, window_bounds = array<i64: 1, 256>}, {pipeline_mode = #tpu.pipeline_mode<synchronous>, transform_indices = @transform_9, window_bounds = array<i64: 256, 1>}, {pipeline_mode = #tpu.pipeline_mode<synchronous>, transform_indices = @transform_10, window_bounds = array<i64: 1, 1>}, {transform_indices = @transform_11, window_bounds = array<i64: 8, 1>}]} {
    %c0 = arith.constant 0 : index
    %c0_0 = arith.constant 0 : index
    %0 = vector.load %arg1[%c0, %c0_0] : memref<8x12xf32, #tpu.memory_space<vmem>>, vector<8x12xf32>
    %c0_1 = arith.constant 0 : index
    %c0_2 = arith.constant 0 : index
    %1 = vector.load %arg4[%c0_1, %c0_2] : memref<12x256xbf16, #tpu.memory_space<vmem>>, vector<12x256xbf16>
    %2 = arith.extf %1 : vector<12x256xbf16> to vector<12x256xf32>
    %cst = arith.constant dense<0.000000e+00> : vector<8x256xf32>
    %3 = tpu.matmul %0, %2, %cst {dimension_numbers = #tpu.dot_dimension_numbers<[1], [0], [0], [1], [0, 0, 1, 1], [], []>} : vector<8x12xf32>, vector<12x256xf32>, vector<8x256xf32> -> vector<8x256xf32>
    %c0_3 = arith.constant 0 : index
    %c0_4 = arith.constant 0 : index
    %4 = vector.load %arg2[%c0_3, %c0_4] : memref<8x12xf32, #tpu.memory_space<vmem>>, vector<8x12xf32>
    %c0_5 = arith.constant 0 : index
    %c0_6 = arith.constant 0 : index
    %5 = vector.load %arg5[%c0_5, %c0_6] : memref<12x256xbf16, #tpu.memory_space<vmem>>, vector<12x256xbf16>
    %6 = arith.extf %5 : vector<12x256xbf16> to vector<12x256xf32>
    %cst_7 = arith.constant dense<0.000000e+00> : vector<8x256xf32>
    %7 = tpu.matmul %4, %6, %cst_7 {dimension_numbers = #tpu.dot_dimension_numbers<[1], [0], [0], [1], [0, 0, 1, 1], [], []>} : vector<8x12xf32>, vector<12x256xf32>, vector<8x256xf32> -> vector<8x256xf32>
    %8 = arith.addf %3, %7 : vector<8x256xf32>
    %c0_8 = arith.constant 0 : index
    %c0_9 = arith.constant 0 : index
    %9 = vector.load %arg3[%c0_8, %c0_9] : memref<8x4xf32, #tpu.memory_space<vmem>>, vector<8x4xf32>
    %c0_10 = arith.constant 0 : index
    %c0_11 = arith.constant 0 : index
    %10 = vector.load %arg6[%c0_10, %c0_11] : memref<4x256xbf16, #tpu.memory_space<vmem>>, vector<4x256xbf16>
    %11 = arith.extf %10 : vector<4x256xbf16> to vector<4x256xf32>
    %cst_12 = arith.constant dense<0.000000e+00> : vector<8x256xf32>
    %12 = tpu.matmul %9, %11, %cst_12 {dimension_numbers = #tpu.dot_dimension_numbers<[1], [0], [0], [1], [0, 0, 1, 1], [], []>} : vector<8x4xf32>, vector<4x256xf32>, vector<8x256xf32> -> vector<8x256xf32>
    %13 = arith.addf %8, %12 : vector<8x256xf32>
    %c0_13 = arith.constant 0 : index
    %c0_14 = arith.constant 0 : index
    %14 = vector.load %arg7[%c0_13, %c0_14] : memref<1x256xf32, #tpu.memory_space<vmem>>, vector<1x256xf32>
    %15 = vector.broadcast %14 : vector<1x256xf32> to vector<8x256xf32>
    %16 = arith.addf %13, %15 : vector<8x256xf32>
    %cst_15 = arith.constant 0.000000e+00 : f32
    %17 = vector.broadcast %cst_15 : f32 to vector<8x256xf32>
    %18 = arith.maximumf %16, %17 : vector<8x256xf32>
    %c0_16 = arith.constant 0 : index
    %c0_17 = arith.constant 0 : index
    %19 = vector.load %arg8[%c0_16, %c0_17] : memref<256x256xbf16, #tpu.memory_space<vmem>>, vector<256x256xbf16>
    %20 = arith.extf %19 : vector<256x256xbf16> to vector<256x256xf32>
    %cst_18 = arith.constant dense<0.000000e+00> : vector<8x256xf32>
    %21 = tpu.matmul %18, %20, %cst_18 {dimension_numbers = #tpu.dot_dimension_numbers<[1], [0], [0], [1], [0, 0, 1, 1], [], []>} : vector<8x256xf32>, vector<256x256xf32>, vector<8x256xf32> -> vector<8x256xf32>
    %c0_19 = arith.constant 0 : index
    %c0_20 = arith.constant 0 : index
    %22 = vector.load %arg9[%c0_19, %c0_20] : memref<1x256xf32, #tpu.memory_space<vmem>>, vector<1x256xf32>
    %23 = vector.broadcast %22 : vector<1x256xf32> to vector<8x256xf32>
    %24 = arith.addf %21, %23 : vector<8x256xf32>
    %cst_21 = arith.constant 0.000000e+00 : f32
    %25 = vector.broadcast %cst_21 : f32 to vector<8x256xf32>
    %26 = arith.maximumf %24, %25 : vector<8x256xf32>
    %c0_22 = arith.constant 0 : index
    %c0_23 = arith.constant 0 : index
    %27 = vector.load %arg10[%c0_22, %c0_23] : memref<256x1xbf16, #tpu.memory_space<vmem>>, vector<256x1xbf16>
    %28 = arith.extf %27 : vector<256x1xbf16> to vector<256x1xf32>
    %cst_24 = arith.constant dense<0.000000e+00> : vector<8x1xf32>
    %29 = tpu.matmul %26, %28, %cst_24 {dimension_numbers = #tpu.dot_dimension_numbers<[1], [0], [0], [1], [0, 0, 1, 1], [], []>} : vector<8x256xf32>, vector<256x1xf32>, vector<8x1xf32> -> vector<8x1xf32>
    %c0_25 = arith.constant 0 : index
    %c0_26 = arith.constant 0 : index
    %30 = vector.load %arg11[%c0_25, %c0_26] : memref<1x1xf32, #tpu.memory_space<vmem>>, vector<1x1xf32>
    %31 = vector.broadcast %30 : vector<1x1xf32> to vector<8x1xf32>
    %32 = arith.addf %29, %31 : vector<8x1xf32>
    %c0_27 = arith.constant 0 : index
    %c0_28 = arith.constant 0 : index
    %33 = vector.load %arg12[%c0_27, %c0_28] : memref<8x1xf32, #tpu.memory_space<vmem>>, vector<8x1xf32>
    tpu.vector_store %arg12[%c0_27, %c0_28], %32 {strides = array<i32>} : memref<8x1xf32, #tpu.memory_space<vmem>>, vector<8x1xf32>,
    return
  }
  func.func @transform_0(%arg0: i32) -> (i32, i32) {
    %c0_i32 = arith.constant 0 : i32
    %c0_i32_0 = arith.constant 0 : i32
    return %arg0, %c0_i32 : i32, i32
  }
  func.func @transform_1(%arg0: i32) -> (i32, i32) {
    %c0_i32 = arith.constant 0 : i32
    %c0_i32_0 = arith.constant 0 : i32
    return %arg0, %c0_i32 : i32, i32
  }
  func.func @transform_2(%arg0: i32) -> (i32, i32) {
    %c0_i32 = arith.constant 0 : i32
    %c0_i32_0 = arith.constant 0 : i32
    return %arg0, %c0_i32 : i32, i32
  }
  func.func @transform_3(%arg0: i32) -> (i32, i32) {
    %c0_i32 = arith.constant 0 : i32
    %c0_i32_0 = arith.constant 0 : i32
    %c0_i32_1 = arith.constant 0 : i32
    return %c0_i32, %c0_i32_0 : i32, i32
  }
  func.func @transform_4(%arg0: i32) -> (i32, i32) {
    %c0_i32 = arith.constant 0 : i32
    %c0_i32_0 = arith.constant 0 : i32
    %c0_i32_1 = arith.constant 0 : i32
    return %c0_i32, %c0_i32_0 : i32, i32
  }
  func.func @transform_5(%arg0: i32) -> (i32, i32) {
    %c0_i32 = arith.constant 0 : i32
    %c0_i32_0 = arith.constant 0 : i32
    %c0_i32_1 = arith.constant 0 : i32
    return %c0_i32, %c0_i32_0 : i32, i32
  }
  func.func @transform_6(%arg0: i32) -> (i32, i32) {
    %c0_i32 = arith.constant 0 : i32
    %c0_i32_0 = arith.constant 0 : i32
    %c0_i32_1 = arith.constant 0 : i32
    return %c0_i32, %c0_i32_0 : i32, i32
  }
  func.func @transform_7(%arg0: i32) -> (i32, i32) {
    %c0_i32 = arith.constant 0 : i32
    %c0_i32_0 = arith.constant 0 : i32
    %c0_i32_1 = arith.constant 0 : i32
    return %c0_i32, %c0_i32_0 : i32, i32
  }
  func.func @transform_8(%arg0: i32) -> (i32, i32) {
    %c0_i32 = arith.constant 0 : i32
    %c0_i32_0 = arith.constant 0 : i32
    %c0_i32_1 = arith.constant 0 : i32
    return %c0_i32, %c0_i32_0 : i32, i32
  }
  func.func @transform_9(%arg0: i32) -> (i32, i32) {
    %c0_i32 = arith.constant 0 : i32
    %c0_i32_0 = arith.constant 0 : i32
    %c0_i32_1 = arith.constant 0 : i32
    return %c0_i32, %c0_i32_0 : i32, i32
  }
  func.func @transform_10(%arg0: i32) -> (i32, i32) {
    %c0_i32 = arith.constant 0 : i32
    %c0_i32_0 = arith.constant 0 : i32
    %c0_i32_1 = arith.constant 0 : i32
    return %c0_i32, %c0_i32_0 : i32, i32
  }
  func.func @transform_11(%arg0: i32) -> (i32, i32) {
    %c0_i32 = arith.constant 0 : i32
    %c0_i32_0 = arith.constant 0 : i32
    return %arg0, %c0_i32 : i32, i32
  }
}

</mosaic_0001>

<bundles_post_ra>
// kernel: tpu_custom_call.1
= control target key start
LH: loop header
LB: loop body
LE: loop exit
PB: predicated region body
PF: predicated region fallthrough
CT: control target
= control target key end

     0   :  { %s817_s0 = inlined_call_operand.vmem [shape: f32[8,12], index: 0, kind: input, shape index: {}]   ;;  %s818_s1 = inlined_call_operand.vmem [shape: f32[8,12], index: 1, kind: input, shape index: {}]   ;;  %s819_s2 = inlined_call_operand.vmem [shape: f32[8,4], index: 2, kind: input, shape index: {}]   ;;  %s820_s3 = inlined_call_operand.vmem [shape: bf16[12,256], index: 3, kind: input, shape index: {}]   ;;  %s821_s4 = inlined_call_operand.vmem [shape: bf16[12,256], index: 4, kind: input, shape index: {}]   ;;  %s822_s5 = inlined_call_operand.vmem [shape: bf16[4,256], index: 5, kind: input, shape index: {}]   ;;  %s823_s6 = inlined_call_operand.vmem [shape: f32[1,256], index: 6, kind: input, shape index: {}]   ;;  %s824_s7 = inlined_call_operand.hbm [shape: bf16[256,256], index: 7, kind: input, shape index: {}]   ;;  %s825_s8 = inlined_call_operand.vmem [shape: f32[1,256], index: 8, kind: input, shape index: {}]   ;;  %s826_s9 = inlined_call_operand.vmem [shape: bf16[256,1], index: 9, kind: input, shape index: {}]   ;;  %s827_s10 = inlined_call_operand.<no memory space> [shape: f32[1,1], index: 10, kind: input, shape index: {}]   ;;  %s828_s11 = inlined_call_operand.vmem [shape: f32[8,1], index: 11, kind: output, shape index: {}]  }
   0x1   :  { %v16_v0 = vstv %s827_s10 }
   0x2   :  { %17 = vst [vmem:[#allocation2] sm:$0x1] %v16_v0 }
   0x3   :  { %18 = vsyncpa [#allocation4], 0  ;;  %s37_s21 = sshll.u32 %s824_s7, 4  ;;  %s657_s22 = smov [#allocation3]   ;;  %s38_s21 = int_to_ptr.hbm [resolvable:$true] %s37_s21 }
   0x4   :  { %s39_s23 = sshll.u32 %s657_s22, 4  ;;  %s658_s24 = smov 128   ;;  %s40_s23 = int_to_ptr.vmem [resolvable:$true] %s39_s23 }
   0x5   :  { %s659_s25 = smov 8  }
   0x6   :  { %45 = dma.hbm_to_vmem [thread:$0]  %s38_s21, 4096, %s40_s23, [#allocation4], %s658_s24, %s658_s24, %s659_s25  }
   0x7   :  { %655 = dma.done.wait [#allocation4], 4096  }
   0x8   :  { %656 = vsyncadd [#allocation4], 4294963200  ;;  %v65_v1 = vld [vmem:[%s821_s4 + $0x8] sm:$0x33]  ;;  %vm74_vm0 = vcmask 1043456   ;;  %v64_v2 = vld [vmem:[%s821_s4] sm:$0xff] }
   0x9   :  { %v68_v3 = vunpack.c.l.bf16 %v65_v1  ;;  %v69_v4 = vunpack.c.h.bf16 %v65_v1  ;;  %v66_v5 = vunpack.c.l.bf16 %v64_v2  ;;  %v67_v6 = vunpack.c.h.bf16 %v64_v2  ;;  %v63_v7 = vld [vmem:[%s818_s1] sm:$0xff]  ;;  %v58_v8 = vld [vmem:[%s820_s3 + $0x8] sm:$0x33]  ;;  %v250_v22 = vld [vmem:[#allocation3 + $0x68] sm:$0xff] }
   0xa   :  { %v57_v9 = vld [vmem:[%s820_s3] sm:$0xff]  ;;  %vm70_vm1 = vcmask 97280   ;;  %v61_v12 = vunpack.c.l.bf16 %v58_v8  ;;  %v62_v13 = vunpack.c.h.bf16 %v58_v8  ;;  %v266_v23 = vld [vmem:[#allocation3 + $0xe8] sm:$0xff]  ;;  %v295_v26 = vunpack.c.l.bf16 %v250_v22  ;;  %v249_v28 = vld [vmem:[#allocation3 + $0x60] sm:$0xff] }
   0xb   :  { %v171_v10 = vld [vmem:[%s822_s5] sm:$0xf]  ;;  %536 = vmatpush.msk.msra.mxu0 %vm74_vm0, %v68_v3  ;;  %538 = vmatpush.msk.msra.mxu1 %vm74_vm0, %v69_v4  ;;  %v59_v20 = vunpack.c.l.bf16 %v57_v9  ;;  %v60_v21 = vunpack.c.h.bf16 %v57_v9  ;;  %v327_v27 = vunpack.c.l.bf16 %v266_v23  ;;  %v265_v29 = vld [vmem:[#allocation3 + $0xe0] sm:$0xff]  ;;  %v293_v35 = vunpack.c.l.bf16 %v249_v28  ;;  %v246_v56 = vld [vmem:[#allocation3 + $0x48] sm:$0xff] }
   0xc   :  { %v252_v11 = vld [vmem:[#allocation3 + $0x78] sm:$0xff]  ;;  %v172_v14 = vunpack.c.l.bf16 %v171_v10  ;;  %v251_v16 = vld [vmem:[#allocation3 + $0x70] sm:$0xff]  ;;  %v325_v36 = vunpack.c.l.bf16 %v265_v29  ;;  %v296_v39 = vunpack.c.h.bf16 %v250_v22  ;;  %v328_v40 = vunpack.c.h.bf16 %v266_v23  ;;  %v262_v57 = vld [vmem:[#allocation3 + $0xc8] sm:$0xff] }
   0xd   :  { %v268_v15 = vld [vmem:[#allocation3 + $0xf8] sm:$0xff]  ;;  %v267_v17 = vld [vmem:[#allocation3 + $0xf0] sm:$0xff]  ;;  %v299_v18 = vunpack.c.l.bf16 %v252_v11  ;;  %96 = vmatpush.msra.mxu0 %v66_v5  ;;  %116 = vmatpush.msra.mxu1 %v67_v6  ;;  %v297_v24 = vunpack.c.l.bf16 %v251_v16  ;;  %v300_v31 = vunpack.c.h.bf16 %v252_v11  ;;  %v298_v37 = vunpack.c.h.bf16 %v251_v16  ;;  %v245_v58 = vld [vmem:[#allocation3 + $0x40] sm:$0xff] }
   0xe   :  { %v331_v19 = vunpack.c.l.bf16 %v268_v15  ;;  %174 = vst [vmem:[#allocation1] ss:$2 sm:$0xff] %v172_v14  ;;  %537 = vmatmul.msk.f32.vlgmr.msra.gmra.mxu0 %vm70_vm1, %v63_v7  ;;  %539 = vmatmul.msk.f32.vlgmr.msra.gmra.mxu1 %vm70_vm1, %v63_v7  ;;  %v329_v25 = vunpack.c.l.bf16 %v267_v17  ;;  %v56_v30 = vld [vmem:[%s817_s0] sm:$0xff]  ;;  %v332_v32 = vunpack.c.h.bf16 %v268_v15  ;;  %v330_v38 = vunpack.c.h.bf16 %v267_v17  ;;  %v261_v63 = vld [vmem:[#allocation3 + $0xc0] sm:$0xff]  ;;  %v242_v16 = vld [vmem:[#allocation3 + $0x28] sm:$0xff] }
   0xf   :  { %540 = vmatpush.msk.msrb.mxu0 %vm74_vm0, %v61_v12  ;;  %542 = vmatpush.msk.msrb.mxu1 %vm74_vm0, %v62_v13  ;;  %v294_v41 = vunpack.c.h.bf16 %v249_v28  ;;  %v326_v42 = vunpack.c.h.bf16 %v265_v29  ;;  %v170_v43 = vld [vmem:[%s819_s2] sm:$0xff]  ;;  %vm177_vm2 = vcmask 31744   ;;  %v287_v59 = vunpack.c.l.bf16 %v246_v56  ;;  %v258_v17 = vld [vmem:[#allocation3 + $0xa8] sm:$0xff]  ;;  %v257_v23 = vld [vmem:[#allocation3 + $0xa0] sm:$0xff] }
  0x10   :  { %339 = vmatpush.msra.mxu2 %v299_v18  ;;  %359 = vmatpush.msra.mxu3 %v331_v19  ;;  %v248_v44 = vld [vmem:[#allocation3 + $0x58] sm:$0xff]  ;;  %v247_v50 = vld [vmem:[#allocation3 + $0x50] sm:$0xff]  ;;  %v288_v60 = vunpack.c.h.bf16 %v246_v56  ;;  %v319_v61 = vunpack.c.l.bf16 %v262_v57  ;;  %v320_v62 = vunpack.c.h.bf16 %v262_v57  ;;  %v285_v0 = vunpack.c.l.bf16 %v245_v58  ;;  %v241_v18 = vld [vmem:[#allocation3 + $0x20] sm:$0xff] }
  0x11   :  { %145 = vmatpush.msrb.mxu0 %v59_v20  ;;  %165 = vmatpush.msrb.mxu1 %v60_v21  ;;  %v264_v45 = vld [vmem:[#allocation3 + $0xd8] sm:$0xff]  ;;  %v291_v46 = vunpack.c.l.bf16 %v248_v44  ;;  %v292_v47 = vunpack.c.h.bf16 %v248_v44  ;;  %v263_v51 = vld [vmem:[#allocation3 + $0xd0] sm:$0xff]  ;;  %v289_v52 = vunpack.c.l.bf16 %v247_v50  ;;  %v290_v53 = vunpack.c.h.bf16 %v247_v50 }
  0x12   :  { %340 = vmatpush.msra.mxu2 %v297_v24  ;;  %360 = vmatpush.msra.mxu3 %v329_v25  ;;  %v323_v48 = vunpack.c.l.bf16 %v264_v45  ;;  %v324_v49 = vunpack.c.h.bf16 %v264_v45  ;;  %v321_v54 = vunpack.c.l.bf16 %v263_v51  ;;  %v322_v55 = vunpack.c.h.bf16 %v263_v51  ;;  %v244_v4 = vld [vmem:[#allocation3 + $0x38] sm:$0xff]  ;;  %v243_v10 = vld [vmem:[#allocation3 + $0x30] sm:$0xff] }
  0x13   :  { %v317_v1 = vunpack.c.l.bf16 %v261_v63  ;;  %v286_v2 = vunpack.c.h.bf16 %v245_v58  ;;  %v318_v3 = vunpack.c.h.bf16 %v261_v63  ;;  %v260_v5 = vld [vmem:[#allocation3 + $0xb8] sm:$0xff]  ;;  %v283_v6 = vunpack.c.l.bf16 %v244_v4  ;;  %v259_v11 = vld [vmem:[#allocation3 + $0xb0] sm:$0xff]  ;;  %v617_v58 = vld [vmem:[%s826_s9 + $0x30] sm:$0xff]  }
  0x14   :  { %341 = vmatpush.msra.mxu2 %v295_v26  ;;  %361 = vmatpush.msra.mxu3 %v327_v27  ;;  %v284_v7 = vunpack.c.h.bf16 %v244_v4  ;;  %v315_v8 = vunpack.c.l.bf16 %v260_v5  ;;  %v316_v9 = vunpack.c.h.bf16 %v260_v5  ;;  %v281_v12 = vunpack.c.l.bf16 %v243_v10  ;;  %v240_v28 = vld [vmem:[#allocation3 + $0x18] sm:$0xff] }
  0x15   :  { %v175_v33 = vld.sshfl [vmem:[#allocation1] sm:$0xff pattern:$0x75316420]  ;;  %v176_v34 = vld.sshfl [vmem:[#allocation1 + $0x8] sm:$0xff pattern:$0x75316420]  ;;  %v282_v13 = vunpack.c.h.bf16 %v243_v10  ;;  %v313_v14 = vunpack.c.l.bf16 %v259_v11  ;;  %v314_v15 = vunpack.c.h.bf16 %v259_v11  ;;  %v279_v19 = vunpack.c.l.bf16 %v242_v16 }
  0x16   :  { %544 = vmatpush.msk.msra.mxu0 %vm74_vm0, %v175_v33  ;;  %546 = vmatpush.msk.msra.mxu1 %vm74_vm0, %v176_v34  ;;  %v280_v20 = vunpack.c.h.bf16 %v242_v16  ;;  %v311_v21 = vunpack.c.l.bf16 %v258_v17  ;;  %v312_v22 = vunpack.c.h.bf16 %v258_v17  ;;  %v277_v24 = vunpack.c.l.bf16 %v241_v18  ;;  %v256_v29 = vld [vmem:[#allocation3 + $0x98] sm:$0xff]  ;;  %v239_v34 = vld [vmem:[#allocation3 + $0x10] sm:$0xff] }
  0x17   :  { %541 = vmatmul.msk.f32.vlgmr.msrb.gmra.mxu0 %vm70_vm1, %v56_v30  ;;  %543 = vmatmul.msk.f32.vlgmr.msrb.gmra.mxu1 %vm70_vm1, %v56_v30  ;;  %v278_v25 = vunpack.c.h.bf16 %v241_v18  ;;  %v309_v26 = vunpack.c.l.bf16 %v257_v23  ;;  %v310_v27 = vunpack.c.h.bf16 %v257_v23  ;;  %v275_v30 = vunpack.c.l.bf16 %v240_v28  ;;  %v616_v63 = vld [vmem:[%s826_s9 + $0x28] sm:$0xff]   ;;  %v227_v23 = vld [vmem:[%s823_s6] sm:$0x3] }
  0x18   :  { %379 = vmatpush.msrb.mxu0 %v300_v31  ;;  %399 = vmatpush.msrb.mxu1 %v332_v32  ;;  %v276_v31 = vunpack.c.h.bf16 %v240_v28  ;;  %v307_v32 = vunpack.c.l.bf16 %v256_v29  ;;  %v308_v33 = vunpack.c.h.bf16 %v256_v29  ;;  %v230_v28 = vperm.slane %v227_v23, 1 }
  0x19   :  { %342 = vmatpush.msra.mxu2 %v293_v35  ;;  %362 = vmatpush.msra.mxu3 %v325_v36  ;;  %v255_v35 = vld [vmem:[#allocation3 + $0x90] sm:$0xff]  ;;  %v273_v36 = vunpack.c.l.bf16 %v239_v34  ;;  %vm529_vm3 = vcmask 7168  }
  0x1a   :  { %380 = vmatpush.msrb.mxu0 %v298_v37  ;;  %400 = vmatpush.msrb.mxu1 %v330_v38  ;;  %v274_v37 = vunpack.c.h.bf16 %v239_v34  ;;  %v305_v38 = vunpack.c.l.bf16 %v255_v35 }
  0x1b   :  { %343 = vmatpush.msra.mxu2 %v291_v46  ;;  %363 = vmatpush.msra.mxu3 %v323_v48 }
  0x1c   :  { %381 = vmatpush.msrb.mxu0 %v296_v39  ;;  %401 = vmatpush.msrb.mxu1 %v328_v40  ;;  %v306_v39 = vunpack.c.h.bf16 %v255_v35  ;;  %v238_v40 = vld [vmem:[#allocation3 + $0x8] sm:$0xff] }
  0x1d   :  { %344 = vmatpush.msra.mxu2 %v289_v52  ;;  %364 = vmatpush.msra.mxu3 %v321_v54  ;;  %v272_v44 = vunpack.c.h.bf16 %v238_v40  ;;  %v626_v52 = vld [vmem:[%s826_s9 + $0x78] sm:$0xff]  }
  0x1e   :  { %382 = vmatpush.msrb.mxu0 %v294_v41  ;;  %402 = vmatpush.msrb.mxu1 %v326_v42  ;;  %v254_v41 = vld [vmem:[#allocation3 + $0x88] sm:$0xff]  ;;  %v237_v42 = vld [vmem:[#allocation3] sm:$0xff]  ;;  %v610_v56 = vunpack.c.l.bf16 %v626_v52 }
  0x1f   :  { %545 = vmatmul.msk.f32.vlgmr.msra.gmra.mxu0 %vm177_vm2, %v170_v43  ;;  %547 = vmatmul.msk.f32.vlgmr.msra.gmra.mxu1 %vm177_vm2, %v170_v43  ;;  %v271_v43 = vunpack.c.l.bf16 %v238_v40  ;;  %v303_v45 = vunpack.c.l.bf16 %v254_v41  ;;  %v304_v46 = vunpack.c.h.bf16 %v254_v41  ;;  %v269_v48 = vunpack.c.l.bf16 %v237_v42  ;;  %v618_v54 = vld [vmem:[%s826_s9 + $0x38] sm:$0xff]   ;;  %v613_v40 = vld [vmem:[%s826_s9 + $0x10] sm:$0xff]  }
  0x20   :  { %383 = vmatpush.msrb.mxu0 %v292_v47  ;;  %403 = vmatpush.msrb.mxu1 %v324_v49  ;;  %v253_v47 = vld [vmem:[#allocation3 + $0x80] sm:$0xff]  ;;  %v270_v49 = vunpack.c.h.bf16 %v237_v42  ;;  %v579_v57 = vunpack.c.h.bf16 %v618_v54  ;;  %v559_v41 = vunpack.c.h.bf16 %v613_v40 }
  0x21   :  { %345 = vmatpush.msra.mxu2 %v287_v59  ;;  %365 = vmatpush.msra.mxu3 %v319_v61  ;;  %v301_v50 = vunpack.c.l.bf16 %v253_v47  ;;  %v302_v51 = vunpack.c.h.bf16 %v253_v47  ;;  %v578_v59 = vunpack.c.l.bf16 %v618_v54  ;;  %v575_v61 = vunpack.c.h.bf16 %v617_v58 }
  0x22   :  { %384 = vmatpush.msrb.mxu0 %v290_v53  ;;  %404 = vmatpush.msrb.mxu1 %v322_v55  ;;  %v625_v53 = vld [vmem:[%s826_s9 + $0x70] sm:$0xff]   ;;  %v611_v55 = vunpack.c.h.bf16 %v626_v52 }
  0x23   :  { %346 = vmatpush.msra.mxu2 %v285_v0  ;;  %366 = vmatpush.msra.mxu3 %v317_v1  ;;  %v606_v0 = vunpack.c.l.bf16 %v625_v53  ;;  %v574_v1 = vunpack.c.l.bf16 %v617_v58 }
  0x24   :  { %385 = vmatpush.msrb.mxu0 %v288_v60  ;;  %405 = vmatpush.msrb.mxu1 %v320_v62  ;;  %v607_v60 = vunpack.c.h.bf16 %v625_v53  ;;  %v624_v62 = vld [vmem:[%s826_s9 + $0x68] sm:$0xff]   ;;  %v333_v53 = vld [vmem:[%s825_s8] sm:$0x3] }
  0x25   :  { %347 = vmatpush.msra.mxu2 %v283_v6  ;;  %367 = vmatpush.msra.mxu3 %v315_v8  ;;  %v623_v6 = vld [vmem:[%s826_s9 + $0x60] sm:$0xff]   ;;  %v602_v8 = vunpack.c.l.bf16 %v624_v62  ;;  %v336_v54 = vperm.slane %v333_v53, 1  ;;  %v335_v58 = vperm.slane %v333_v53, 0 }
  0x26   :  { %386 = vmatpush.msrb.mxu0 %v286_v2  ;;  %406 = vmatpush.msrb.mxu1 %v318_v3  ;;  %v603_v2 = vunpack.c.h.bf16 %v624_v62  ;;  %v571_v3 = vunpack.c.h.bf16 %v616_v63  ;;  %v599_v10 = vunpack.c.h.bf16 %v623_v6 }
  0x27   :  { %348 = vmatpush.msra.mxu2 %v281_v12  ;;  %368 = vmatpush.msra.mxu3 %v313_v14  ;;  %v622_v12 = vld [vmem:[%s826_s9 + $0x58] sm:$0xff]   ;;  %v598_v14 = vunpack.c.l.bf16 %v623_v6 }
  0x28   :  { %387 = vmatpush.msrb.mxu0 %v284_v7  ;;  %407 = vmatpush.msrb.mxu1 %v316_v9  ;;  %v615_v7 = vld [vmem:[%s826_s9 + $0x20] sm:$0xff]   ;;  %v570_v9 = vunpack.c.l.bf16 %v616_v63  ;;  %v595_v16 = vunpack.c.h.bf16 %v622_v12 }
  0x29   :  { %349 = vmatpush.msra.mxu2 %v279_v19  ;;  %369 = vmatpush.msra.mxu3 %v311_v21  ;;  %v567_v11 = vunpack.c.h.bf16 %v615_v7  ;;  %v594_v21 = vunpack.c.l.bf16 %v622_v12 }
  0x2a   :  { %388 = vmatpush.msrb.mxu0 %v282_v13  ;;  %408 = vmatpush.msrb.mxu1 %v314_v15  ;;  %v614_v13 = vld [vmem:[%s826_s9 + $0x18] sm:$0xff]   ;;  %v566_v15 = vunpack.c.l.bf16 %v615_v7 }
  0x2b   :  { %350 = vmatpush.msra.mxu2 %v277_v24  ;;  %370 = vmatpush.msra.mxu3 %v309_v26  ;;  %v563_v17 = vunpack.c.h.bf16 %v614_v13 }
  0x2c   :  { %389 = vmatpush.msrb.mxu0 %v280_v20  ;;  %409 = vmatpush.msrb.mxu1 %v312_v22  ;;  %v621_v20 = vld [vmem:[%s826_s9 + $0x50] sm:$0xff]  }
  0x2d   :  { %351 = vmatpush.msra.mxu2 %v275_v30  ;;  %371 = vmatpush.msra.mxu3 %v307_v32  ;;  %v591_v22 = vunpack.c.h.bf16 %v621_v20  ;;  %v590_v24 = vunpack.c.l.bf16 %v621_v20 }
  0x2e   :  { %390 = vmatpush.msrb.mxu0 %v278_v25  ;;  %410 = vmatpush.msrb.mxu1 %v310_v27  ;;  %v229_v27 = vperm.slane %v227_v23, 0 }
  0x2f   :  { %352 = vmatpush.msra.mxu2 %v273_v36  ;;  %372 = vmatpush.msra.mxu3 %v305_v38  ;;  %v562_v38 = vunpack.c.l.bf16 %v614_v13 }
  0x30   :  { %391 = vmatpush.msrb.mxu0 %v276_v31  ;;  %411 = vmatpush.msrb.mxu1 %v308_v33 }
  0x31   :  { %353 = vmatpush.msra.mxu2 %v271_v43  ;;  %373 = vmatpush.msra.mxu3 %v303_v45  ;;  %v619_v43 = vld [vmem:[%s826_s9 + $0x40] sm:$0xff]  }
  0x32   :  { %392 = vmatpush.msrb.mxu0 %v274_v37  ;;  %412 = vmatpush.msrb.mxu1 %v306_v39  ;;  %v620_v37 = vld [vmem:[%s826_s9 + $0x48] sm:$0xff]   ;;  %v583_v45 = vunpack.c.h.bf16 %v619_v43 }
  0x33   :  { %354 = vmatpush.msra.mxu2 %v269_v48  ;;  %374 = vmatpush.msra.mxu3 %v301_v50  ;;  %v587_v39 = vunpack.c.h.bf16 %v620_v37  ;;  %v586_v42 = vunpack.c.l.bf16 %v620_v37  ;;  %v582_v48 = vunpack.c.l.bf16 %v619_v43  ;;  %v549_v50 = vld [vmem:[%s826_s9] sm:$0xff]  }
  0x34   :  { %393 = vmatpush.msrb.mxu0 %v272_v44  ;;  %413 = vmatpush.msrb.mxu1 %v304_v46  ;;  %v558_v44 = vunpack.c.l.bf16 %v613_v40  ;;  %v612_v46 = vld [vmem:[%s826_s9 + $0x8] sm:$0xff]   ;;  %v550_v52 = vunpack.c.l.bf16 %v549_v50 }
  0x35   :  { %509 = vmatpush.msrb.mxu3 %v611_v55  ;;  %489 = vmatpush.msrb.mxu2 %v579_v57  ;;  %v555_v47 = vunpack.c.h.bf16 %v612_v46 }
  0x36   :  { %394 = vmatpush.msrb.mxu0 %v270_v49  ;;  %414 = vmatpush.msrb.mxu1 %v302_v51  ;;  %v554_v49 = vunpack.c.l.bf16 %v612_v46  ;;  %v551_v51 = vunpack.c.h.bf16 %v549_v50 }
  0x37   :  { %510 = vmatpush.msrb.mxu3 %v610_v56  ;;  %490 = vmatpush.msrb.mxu2 %v578_v59 }
  0x39   :  { %511 = vmatpush.msrb.mxu3 %v607_v60  ;;  %491 = vmatpush.msrb.mxu2 %v575_v61 }
  0x3b   :  { %512 = vmatpush.msrb.mxu3 %v606_v0  ;;  %492 = vmatpush.msrb.mxu2 %v574_v1 }
  0x3d   :  { %513 = vmatpush.msrb.mxu3 %v603_v2  ;;  %493 = vmatpush.msrb.mxu2 %v571_v3  ;;  %v630_v2 = vld [vmem:[#allocation2] ss:$0 sm:$0xff] }
  0x3f   :  { %514 = vmatpush.msrb.mxu3 %v602_v8  ;;  %494 = vmatpush.msrb.mxu2 %v570_v9 }
  0x41   :  { %515 = vmatpush.msrb.mxu3 %v599_v10  ;;  %495 = vmatpush.msrb.mxu2 %v567_v11 }
  0x43   :  { %516 = vmatpush.msrb.mxu3 %v598_v14  ;;  %496 = vmatpush.msrb.mxu2 %v566_v15 }
  0x45   :  { %517 = vmatpush.msrb.mxu3 %v595_v16  ;;  %497 = vmatpush.msrb.mxu2 %v563_v17 }
  0x47   :  { %518 = vmatpush.msrb.mxu3 %v594_v21  ;;  %498 = vmatpush.msrb.mxu2 %v562_v38 }
  0x49   :  { %519 = vmatpush.msrb.mxu3 %v591_v22  ;;  %499 = vmatpush.msrb.mxu2 %v559_v41 }
  0x4b   :  { %520 = vmatpush.msrb.mxu3 %v590_v24  ;;  %500 = vmatpush.msrb.mxu2 %v558_v44 }
  0x4d   :  { %521 = vmatpush.msrb.mxu3 %v587_v39  ;;  %501 = vmatpush.msrb.mxu2 %v555_v47 }
  0x4f   :  { %522 = vmatpush.msrb.mxu3 %v586_v42  ;;  %502 = vmatpush.msrb.mxu2 %v554_v49 }
  0x51   :  { %523 = vmatpush.msrb.mxu3 %v583_v45  ;;  %503 = vmatpush.msrb.mxu2 %v551_v51 }
  0x53   :  { %524 = vmatpush.msrb.mxu3 %v582_v48  ;;  %504 = vmatpush.msrb.mxu2 %v550_v52 }
  0x8b   :  { %v98_v4 = vpop.f32.mrf.mxu0  ;;  %v118_v5 = vpop.f32.mrf.mxu1 }
  0x94   :  { %v147_v18 = vpop.f32.mrf.mxu0  ;;  %v167_v19 = vpop.f32.mrf.mxu1 }
  0x95   :  { %v148_v25 = vadd.f32 %v147_v18, %v98_v4  ;;  %v168_v26 = vadd.f32 %v167_v19, %v118_v5 }
  0x9c   :  { %v202_v29 = vpop.f32.mrf.mxu0  ;;  %v222_v30 = vpop.f32.mrf.mxu1 }
  0x9d   :  { %v225_v31 = vadd.f32 %v202_v29, %v148_v25  ;;  %v226_v32 = vadd.f32 %v222_v30, %v168_v26 }
  0x9f   :  { %v233_v33 = vadd.f32 %v229_v27, %v225_v31  ;;  %v234_v34 = vadd.f32 %v230_v28, %v226_v32 }
  0xa1   :  { %v235_v35 = vmax.f32 %v233_v33, 0.0  ;;  %v236_v36 = vmax.f32 %v234_v34, 0.0 }
  0xa3   :  { %355 = vmatmul.f32.vlgmr.msra.gmra.mxu2 %v235_v35  ;;  %375 = vmatmul.f32.vlgmr.msra.gmra.mxu3 %v236_v36 }
  0xa4   :  { %395 = vmatmul.f32.vlgmr.msrb.gmra.mxu0 %v235_v35  ;;  %415 = vmatmul.f32.vlgmr.msrb.gmra.mxu1 %v236_v36 }
 0x121   :  { %v396_v55 = vpop.f32.mrf.mxu0  ;;  %v416_v57 = vpop.f32.mrf.mxu1 }
 0x122   :  { %v397_v56 = vadd.f32 %v396_v55, %v336_v54 }
 0x124   :  { %v417_v59 = vadd.f32 %v416_v57, %v397_v56 }
 0x126   :  { %v420_v60 = vmax.f32 %v417_v59, 0.0  ;;  %v356_v61 = vpop.f32.mrf.mxu2  ;;  %v376_v63 = vpop.f32.mrf.mxu3 }
 0x127   :  { %v357_v62 = vadd.f32 %v356_v61, %v335_v58 }
 0x128   :  { %525 = vmatmul.f32.vlgmr.msrb.gmra.mxu3 %v420_v60 }
 0x129   :  { %v377_v0 = vadd.f32 %v376_v63, %v357_v62 }
 0x12b   :  { %v419_v1 = vmax.f32 %v377_v0, 0.0 }
 0x12d   :  { %505 = vmatmul.f32.vlgmr.msrb.gmra.mxu2 %v419_v1 }
 0x1ab   :  { %v526_v5 = vpop.f32.mrf.mxu3 }
 0x1b0   :  { %v506_v3 = vpop.f32.mrf.mxu2 }
 0x1b1   :  { %v507_v4 = vadd.f32 %v630_v2, %v506_v3 }
 0x1b3   :  { %v527_v6 = vadd.f32 %v526_v5, %v507_v4 }
 0x1b5   :  { %530 = vst.msk [vmem:[%s828_s11] sm:$0xff] %vm529_vm3, %v527_v6 }
 0x1b6   :  { %535 = vsyncpa [#allocation4], 1 }

</bundles_post_ra>
